<compile_context>
chip_gen: v7x
topology: tpu7x:2x2x1
jax: 0.10.0
libtpu: 0.0.40
codegen_flags: <defaults>
</compile_context>

<pallas_src>
import functools

import jax
import jax.numpy as jnp
from jax.experimental import pallas as pl
from jax.experimental.pallas import tpu as pltpu


def _round_up(x, m):
    return ((x + m - 1) // m) * m


def _default_vmem_limit_bytes():
    # ~3/4 of physical VMEM, capped at 96 MiB:
    #   v5e/v6e (128 MiB phys) -> 96 MiB;  v7x (64 MiB phys) -> 48 MiB.
    try:
        phys = pltpu.get_tpu_info().vmem_capacity_bytes
    except Exception:  # pragma: no cover - conservative fallback
        phys = 64 * 1024 * 1024
    return min(96 << 20, int(phys) * 3 // 4)


def _auto_tile_n(N, C, itemsize, vmem_limit_bytes):
    """Pick the largest 8-aligned row tile whose working set fits VMEM."""
    n8 = _round_up(N, 8)
    # Per-row VMEM cost: double-buffered input block (2x raw) plus roughly
    # four f32-tile-sized intermediates (cast x / shifted / exp / weighted).
    per_row = 2 * C * itemsize + 16 * C
    budget = max(per_row * 8, int(vmem_limit_bytes * 0.9) - (1 << 20))
    tile_n = max(8, (budget // per_row) // 8 * 8)
    if n8 > 8:
        # Keep at least 2 grid steps so both v7x TensorCores get work.
        tile_n = min(tile_n, _round_up(pl.cdiv(N, 2), 8))
    # TODO(synk): very large C (wide vocab) would need class-dim tiling too.
    return int(min(tile_n, n8))


def _ce_label_smooth_kernel(t_ref, x_ref, o_ref, *, epsilon, num_class,
                            batch_n, tile_n):
    # x_ref: (tile_n, C) logits block; t_ref: (tile_n, 1) int32 targets;
    # o_ref: (1, 128) lane-dense per-tile partial-sum block.
    x = x_ref[...].astype(jnp.float32)
    t = t_ref[...]

    # Numerically stable log-sum-exp pieces (per row).
    m = jnp.max(x, axis=1, keepdims=True)                 # (tile_n, 1)
    shifted = x - m                                       # (tile_n, C)
    lse = jnp.log(jnp.sum(jnp.exp(shifted), axis=1, keepdims=True))

    # Fused smoothed-weight reduction:
    #   w_c = eps/C + (1-eps) * [c == target]
    #   row_loss = lse - sum_c w_c * shifted_c
    col = jax.lax.broadcasted_iota(jnp.int32, x.shape, 1)
    off_w = epsilon / num_class
    on_w = (1.0 - epsilon) + off_w
    w = jnp.where(col == t, on_w, off_w)
    weighted = jnp.sum(w * shifted, axis=1, keepdims=True)
    row_loss = lse - weighted                             # (tile_n, 1)

    def _store(vals):
        s = jnp.sum(vals, axis=0, keepdims=True)          # (1, 1)
        o_ref[...] = jnp.broadcast_to(s, o_ref.shape)     # lane-dense (1, 128)

    rem = batch_n % tile_n
    if rem == 0:
        # Every tile is full: no masking anywhere (steady-state fast path).
        _store(row_loss)
    else:
        is_last = pl.program_id(0) == pl.num_programs(0) - 1

        @pl.when(jnp.logical_not(is_last))
        def _():
            _store(row_loss)

        @pl.when(is_last)
        def _():
            # Select (not multiply) BEFORE the reduction so NaN/Inf from
            # out-of-range padded rows cannot poison the tile sum.
            ridx = jax.lax.broadcasted_iota(jnp.int32, row_loss.shape, 0)
            _store(jnp.where(ridx < rem, row_loss, 0.0))


def cross_entropy_label_smooth(inputs, targets, *, num_class, epsilon=0.1,
                               tile_n=None, vmem_limit_bytes=None):
    """inputs: (N, C) float logits; targets: (N,) int class ids. Returns scalar f32."""
    N, C = inputs.shape
    assert num_class == C, (
        f"num_class ({num_class}) must equal logits class dim ({C}) for "
        "label smoothing to be exact")

    if vmem_limit_bytes is None:
        vmem_limit_bytes = _default_vmem_limit_bytes()
    if tile_n is None:
        tile_n = _auto_tile_n(N, C, jnp.dtype(inputs.dtype).itemsize,
                              vmem_limit_bytes)
    assert tile_n % 8 == 0, "tile_n must be a multiple of 8 (sublane tiling)"

    num_tiles = pl.cdiv(N, tile_n)
    targets2d = targets.astype(jnp.int32).reshape(N, 1)

    kernel = functools.partial(
        _ce_label_smooth_kernel,
        epsilon=float(epsilon),
        num_class=int(num_class),
        batch_n=int(N),
        tile_n=int(tile_n),
    )

    partials = pl.pallas_call(
        kernel,
        out_shape=jax.ShapeDtypeStruct((1, num_tiles * 128), jnp.float32),
        grid_spec=pl.GridSpec(
            grid=(num_tiles,),
            in_specs=[
                pl.BlockSpec((tile_n, 1), lambda i: (i, 0)),   # targets
                pl.BlockSpec((tile_n, C), lambda i: (i, 0)),   # logits
            ],
            out_specs=pl.BlockSpec((1, 128), lambda i: (0, i)),
        ),
        compiler_params=pltpu.CompilerParams(
            dimension_semantics=("parallel",),
            vmem_limit_bytes=int(vmem_limit_bytes),
        ),
    )(targets2d, inputs)

    # Each 128-lane chunk holds its tile's partial sum (broadcast); pick lane 0.
    per_tile = partials.reshape(num_tiles, 128)[:, 0]
    return jnp.sum(per_tile) / jnp.float32(N)


def _reference(logits, targets, num_class, epsilon):
    log_probs = jax.nn.log_softmax(logits.astype(jnp.float32), axis=1)
    onehot = jax.nn.one_hot(targets, num_class, dtype=jnp.float32)
    smoothed = (1.0 - epsilon) * onehot + epsilon / num_class
    return jnp.sum(jnp.mean(-smoothed * log_probs, axis=0))


if __name__ == "__main__":
    key = jax.random.PRNGKey(0)
    k1, k2, k3, k4 = jax.random.split(key, 4)

    # Case 1: single full tile, f32 logits.
    N, C = 8, 16
    logits = jax.random.normal(k1, (N, C), dtype=jnp.float32)
    targets = jax.random.randint(k2, (N,), 0, C, dtype=jnp.int32)
    loss = cross_entropy_label_smooth(logits, targets, num_class=C, epsilon=0.1)
    jax.block_until_ready(loss)
    ref = _reference(logits, targets, C, 0.1)
    assert jnp.allclose(loss, ref, atol=1e-5, rtol=1e-5), (loss, ref)

    # Case 2: auto-sized tiles -> 2 grid steps (megacore split), bf16 logits,
    # last tile partially masked (N=20 not a multiple of tile_n=16).
    N2, C2 = 20, 16
    logits2 = jax.random.normal(k3, (N2, C2), dtype=jnp.bfloat16)
    targets2 = jax.random.randint(k4, (N2,), 0, C2, dtype=jnp.int32)
    loss2 = cross_entropy_label_smooth(logits2, targets2, num_class=C2,
                                       epsilon=0.1)
    jax.block_until_ready(loss2)
    ref2 = _reference(logits2, targets2, C2, 0.1)
    assert jnp.allclose(loss2, ref2, atol=2e-3, rtol=2e-3), (loss2, ref2)

    # Case 3: explicit small tile -> 3 grid steps, exercises both pl.when
    # branches (full tiles + masked last tile).
    loss3 = cross_entropy_label_smooth(logits2, targets2, num_class=C2,
                                       epsilon=0.1, tile_n=8)
    jax.block_until_ready(loss3)
    assert jnp.allclose(loss3, ref2, atol=2e-3, rtol=2e-3), (loss3, ref2)

    print("KERNEL_OK")
</pallas_src>

<mosaic_0001>
module attributes {stable_mosaic.version = 11 : i64} {
  func.func @_ce_label_smooth_kernel(%arg0: i32, %arg1: memref<8x1xi32, #tpu.memory_space<vmem>>, %arg2: memref<8x16xf32, #tpu.memory_space<vmem>>, %arg3: memref<1x128xf32, #tpu.memory_space<vmem>>) attributes {dimension_semantics = [#tpu.dimension_semantics<parallel>], iteration_bounds = array<i64: 1>, scalar_prefetch = 0 : i64, scratch_operands = 0 : i64, tpu.core_type = #tpu.core_type<tc>, window_params = [{transform_indices = @transform_0, window_bounds = array<i64: 8, 1>}, {transform_indices = @transform_1, window_bounds = array<i64: 8, 16>}, {transform_indices = @transform_2, window_bounds = array<i64: 1, 128>}]} {
    %c0 = arith.constant 0 : index
    %c0_0 = arith.constant 0 : index
    %0 = vector.load %arg2[%c0, %c0_0] : memref<8x16xf32, #tpu.memory_space<vmem>>, vector<8x16xf32>
    %c0_1 = arith.constant 0 : index
    %c0_2 = arith.constant 0 : index
    %1 = vector.load %arg1[%c0_1, %c0_2] : memref<8x1xi32, #tpu.memory_space<vmem>>, vector<8x1xi32>
    %cst = arith.constant dense<0xFF800000> : vector<8xf32>
    %2 = vector.multi_reduction <maximumf>, %0, %cst [1] : vector<8x16xf32> to vector<8xf32>
    %3 = vector.shape_cast %2 : vector<8xf32> to vector<8x1xf32>
    %4 = vector.broadcast %3 : vector<8x1xf32> to vector<8x16xf32>
    %5 = arith.subf %0, %4 : vector<8x16xf32>
    %6 = math.exp %5 : vector<8x16xf32>
    %cst_3 = arith.constant dense<0.000000e+00> : vector<8xf32>
    %7 = vector.multi_reduction <add>, %6, %cst_3 [1] : vector<8x16xf32> to vector<8xf32>
    %8 = vector.shape_cast %7 : vector<8xf32> to vector<8x1xf32>
    %9 = math.log %8 : vector<8x1xf32>
    %10 = tpu.iota {dimensions = array<i32: 1>} : vector<8x16xi32>
    %11 = vector.broadcast %1 : vector<8x1xi32> to vector<8x16xi32>
    %12 = arith.cmpi eq, %10, %11 : vector<8x16xi32>
    %cst_4 = arith.constant 9.062500e-01 : f32
    %cst_5 = arith.constant 6.250000e-03 : f32
    %13 = vector.broadcast %cst_4 : f32 to vector<8x16xf32>
    %14 = vector.broadcast %cst_5 : f32 to vector<8x16xf32>
    %15 = arith.select %12, %13, %14 : vector<8x16xi1>, vector<8x16xf32>
    %16 = arith.mulf %15, %5 : vector<8x16xf32>
    %cst_6 = arith.constant dense<0.000000e+00> : vector<8xf32>
    %17 = vector.multi_reduction <add>, %16, %cst_6 [1] : vector<8x16xf32> to vector<8xf32>
    %18 = vector.shape_cast %17 : vector<8xf32> to vector<8x1xf32>
    %19 = arith.subf %9, %18 : vector<8x1xf32>
    %cst_7 = arith.constant dense<0.000000e+00> : vector<1xf32>
    %20 = vector.multi_reduction <add>, %19, %cst_7 [0] : vector<8x1xf32> to vector<1xf32>
    %21 = vector.shape_cast %20 : vector<1xf32> to vector<1x1xf32>
    %22 = vector.shape_cast %21 : vector<1x1xf32> to vector<1x1xf32>
    %23 = vector.broadcast %22 : vector<1x1xf32> to vector<1x128xf32>
    %c0_8 = arith.constant 0 : index
    %c0_9 = arith.constant 0 : index
    %24 = vector.load %arg3[%c0_8, %c0_9] : memref<1x128xf32, #tpu.memory_space<vmem>>, vector<1x128xf32>
    tpu.vector_store %arg3[%c0_8, %c0_9], %23 {strides = array<i32>} : memref<1x128xf32, #tpu.memory_space<vmem>>, vector<1x128xf32>,
    return
  }
  func.func @transform_0(%arg0: i32) -> (i32, i32) {
    %c0_i32 = arith.constant 0 : i32
    %c0_i32_0 = arith.constant 0 : i32
    return %arg0, %c0_i32 : i32, i32
  }
  func.func @transform_1(%arg0: i32) -> (i32, i32) {
    %c0_i32 = arith.constant 0 : i32
    %c0_i32_0 = arith.constant 0 : i32
    return %arg0, %c0_i32 : i32, i32
  }
  func.func @transform_2(%arg0: i32) -> (i32, i32) {
    %c0_i32 = arith.constant 0 : i32
    %c0_i32_0 = arith.constant 0 : i32
    return %c0_i32, %arg0 : i32, i32
  }
}

</mosaic_0001>

<bundles_post_ra>
// kernel: tpu_custom_call.1
= control target key start
LH: loop header
LB: loop body
LE: loop exit
PB: predicated region body
PF: predicated region fallthrough
CT: control target
= control target key end

     0   :  { %vm14_vm0 = vcmask 130048   ;;  %s130_s0 = inlined_call_operand.vmem [shape: s32[8,1], index: 0, kind: input, shape index: {}]   ;;  %s131_s1 = inlined_call_operand.vmem [shape: f32[8,16], index: 1, kind: input, shape index: {}]   ;;  %s132_s2 = inlined_call_operand.hbm [shape: f32[1,128], index: 2, kind: output, shape index: {}]  }
   0x1   :  { %v12_v0 = vld [vmem:[%s131_s1] sm:$0xff] }
   0x2   :  { %7 = vsyncpa [#allocation3], 0  ;;  %v15_v1 = vsel %vm14_vm0, %v12_v0, -inf  ;;  %v91_v2 = vmov 0   ;;  %v13_v3 = vld [vmem:[%s130_s0] sm:$0xff]  ;;  %v26_v6 = vlaneseq  ;;  %s93_s0 = smov [#allocation2]  }
   0x3   :  { %62 = vset.pattern.permute.xlu0 %v91_v2  ;;  %v92_v10 = vmov 0.00625   ;;  %s51_s1 = sshll.u32 %s93_s0, 4  ;;  %s52_s1 = int_to_ptr.vmem [resolvable:$true] %s51_s1 }
   0x4   :  { %16 = vmax.xlane.f32.xlu0 %v15_v1  ;;  %v27_v8 = vand.u32 127, %v26_v6  ;;  %s67_s13 = scalar_lea.vmem %s52_s1, 16  ;;  %s71_s14 = scalar_lea.vmem %s52_s1, 32 }
   0x5   :  { %p68_p0 = scmp.ne.s32.totalorder %s52_s1, %s67_s13  ;;  %p72_p1 = scmp.lt.s32.totalorder %s52_s1, %s52_s1 }
   0x6   :  { %p73_p2 = scmp.lt.s32.totalorder %s71_s14, %s67_s13 }
   0x8   :  { %p74_p3 = por %p73_p2, %p72_p1 }
   0xa   :  { %p75_p4 = pnand %p74_p3, %p68_p0 }
  0x1a   :  { %29 = vperm.xlu0 %62, %v13_v3  }
  0x91   :  { %v17_v4 = vpop.xlane.xlu0 %16 }
  0x92   :  { %v18_v5 = vsub.f32 %v12_v0, %v17_v4 }
  0x94   :  { %v19_v7 = vmul.f32 1.442695, %v18_v5 }
  0x96   :  { %63 = vpow2.f32 %v19_v7 }
  0x99   :  { %v30_v9 = vpop.permute.xlu0 %29 }
  0x9a   :  { %vm31_vm1 = vcmp.eq.s32.totalorder %v27_v8, %v30_v9 }
  0x9b   :  { %v32_v11 = vsel %vm31_vm1, 0.90625, %v92_v10 }
  0x9c   :  { %v33_v14 = vmul.f32 %v32_v11, %v18_v5 }
  0x9e   :  { %v34_v15 = vsel %vm14_vm0, %v33_v14, 0.0 }
  0xa0   :  { %v64_v12 = vpop.eup %63 }
  0xa1   :  { %v21_v13 = vsel %vm14_vm0, %v64_v12, 0.0 }
  0xa2   :  { %22 = vadd.xlane.f32.xlu1 %v21_v13 }
  0xa6   :  { %35 = vadd.xlane.f32.xlu1 %v34_v15 }
 0x12f   :  { %v23_v16 = vpop.xlane.xlu1 %22 }
 0x130   :  { %65 = vlog2.f32 %v23_v16 }
 0x133   :  { %v36_v19 = vpop.xlane.xlu1 %35 }
 0x13a   :  { %v66_v17 = vpop.eup %65 }
 0x13b   :  { %v25_v18 = vmul.f32 0.6931472, %v66_v17 }
 0x13d   :  { %v37_v20 = vsub.f32 %v25_v18, %v36_v19 }
 0x13f   :  { %v38_v21 = vrot.slane %v37_v20, 4 }
 0x141   :  { %v39_v22 = vadd.f32 %v38_v21, %v37_v20 }
 0x143   :  { %v40_v23 = vrot.slane %v39_v22, 2 }
 0x145   :  { %v41_v24 = vadd.f32 %v40_v23, %v39_v22 }
 0x147   :  { %v42_v25 = vrot.slane %v41_v24, 1 }
 0x149   :  { %v43_v26 = vadd.f32 %v42_v25, %v41_v24 }
 0x14b   :  { %44 = vst [vmem:[#allocation2] sm:$0x1] %v43_v26 }
 0x14c   :  { %78 = shalt.err (!%p75_p4)
}
 0x14d   :  { %s79_s17 = scalar_lea.hbm %s132_s2, 16 }
 0x14e   :  { %p80_p5 = scmp.ne.s32.totalorder %s132_s2, %s79_s17  ;;  %p83_p6 = scmp.lt.u32.totalorder %s79_s17, %s132_s2 }
 0x150   :  { %p85_p7 = pnand %p83_p6, %p80_p5 }
 0x152   :  { %88 = shalt.err (!%p85_p7)
}
 0x153   :  { %54 = dma.vmem_to_hbm [thread:$0]  %s52_s1, 16, %s132_s2, [#allocation3]  }
 0x154   :  { %89 = dma.done.wait [#allocation3], 16  }
 0x155   :  { %90 = vsyncadd [#allocation3], 4294967280 }
 0x156   :  { %58 = vsyncpa [#allocation3], 1 }

</bundles_post_ra>
